<compile_context>
chip_gen: v7x
topology: tpu7x:2x2x1
jax: 0.10.0
libtpu: 0.0.40
codegen_flags: <defaults>
</compile_context>

<pallas_src>
import functools

import jax
import jax.numpy as jnp
from jax import lax
from jax.experimental import pallas as pl
from jax.experimental.pallas import tpu as pltpu


def _temporal_block_kernel(*refs, K, dilation, pad, TL, c_out,
                           halo_w, fold_ds, sep_ds, fuse1, fuse2):
    it = iter(refs)
    x_ref = next(it)                                   # (1, C_in, TL)        bf16
    xp_ref = next(it) if halo_w else None              # (1, C_in, halo_w)    bf16
    w1_ref = next(it)                                  # (R1, K*C_in)         bf16
    b1_ref = next(it)                                  # (R1, 1)              f32
    w2_ref = next(it)                                  # (C_out, K*C_out)     bf16
    b2_ref = next(it)                                  # (C_out, 1)           f32
    wd_ref = next(it) if sep_ds else None              # (C_out, C_in)        bf16
    bd_ref = next(it) if sep_ds else None              # (C_out, 1)           f32
    o_ref = next(it)                                   # (1, C_out, TL)

    t = pl.program_id(1)
    start = t * TL
    d = dilation
    Lh = TL + pad                      # conv1 output window incl. recomputed halo
    c_in = x_ref.shape[1]

    x_cur = x_ref[0]                   # x positions [start, start + TL)

    if pad > 0:
        # Left halo: x positions [start - 2*pad, start); zero where position < 0.
        if halo_w:
            halo = xp_ref[0][:, halo_w - 2 * pad:]
            hcol = lax.broadcasted_iota(jnp.int32, (1, 2 * pad), 1)
            halo = jnp.where(hcol < 2 * pad - start, jnp.zeros_like(halo), halo)
        else:
            halo = jnp.zeros((c_in, 2 * pad), x_cur.dtype)
        xw = jnp.concatenate([halo, x_cur], axis=1)    # (C_in, TL + 2*pad)
    else:
        xw = x_cur

    # ---- conv1 (weight-normed causal dilated), optionally with folded 1x1 ----
    if fuse1:
        xs = jnp.concatenate([xw[:, k * d: k * d + Lh] for k in range(K)], axis=0)
        h1r = jnp.dot(w1_ref[...], xs, preferred_element_type=jnp.float32) + b1_ref[...]
    else:
        h1r = jnp.zeros((w1_ref.shape[0], Lh), jnp.float32)
        for k in range(K):
            h1r = h1r + jnp.dot(w1_ref[:, k * c_in:(k + 1) * c_in],
                                xw[:, k * d: k * d + Lh],
                                preferred_element_type=jnp.float32)
        h1r = h1r + b1_ref[...]

    h1 = jnp.maximum(h1r[:c_out], 0.0)
    if pad > 0:
        # conv1 outputs at positions < 0 act as conv2's causal zero padding.
        col = lax.broadcasted_iota(jnp.int32, (1, Lh), 1)
        h1 = jnp.where(col < pad - start, 0.0, h1)
    h1b = h1.astype(jnp.bfloat16)

    # ---- conv2 + ReLU ----
    if fuse2:
        hs = jnp.concatenate([h1b[:, k * d: k * d + TL] for k in range(K)], axis=0)
        h2 = jnp.dot(w2_ref[...], hs, preferred_element_type=jnp.float32)
    else:
        h2 = jnp.zeros((c_out, TL), jnp.float32)
        for k in range(K):
            h2 = h2 + jnp.dot(w2_ref[:, k * c_out:(k + 1) * c_out],
                              h1b[:, k * d: k * d + TL],
                              preferred_element_type=jnp.float32)
    h2 = jnp.maximum(h2 + b2_ref[...], 0.0)

    # ---- residual path ----
    if fold_ds:
        # Extra rows of the conv1 matmul hold the 1x1 downsample result;
        # tap-(K-1) column of the window is exactly x at the output position.
        res = h1r[c_out:, pad:]
    elif sep_ds:
        res = jnp.dot(wd_ref[...], x_cur,
                      preferred_element_type=jnp.float32) + bd_ref[...]
    else:
        res = x_cur.astype(jnp.float32)

    o_ref[0] = jnp.maximum(h2 + res, 0.0).astype(o_ref.dtype)


def temporal_block(x, w1, b1, w2, b2, wd=None, bd=None, *,
                   kernel_size, dilation, padding, tile_l=None, out_dtype=None):
    """x: (B, C_in, L).  w1: (C_out, C_in, K), w2: (C_out, C_out, K),
    wd: (C_out, C_in) or None, biases (C,)."""
    B, c_in, L = x.shape
    c_out = w1.shape[0]
    K = kernel_size
    pad = padding
    assert pad == (K - 1) * dilation, "causal TCN needs padding == (K-1)*dilation"

    has_downsample = wd is not None
    if not has_downsample:
        assert c_in == c_out, "identity residual requires n_inputs == n_outputs"

    if out_dtype is None:
        out_dtype = x.dtype
    out_dtype = jnp.dtype(out_dtype)

    # ---- static structure decisions (MXU contraction fill) ----
    fuse1 = (K * c_in) < 256
    fuse2 = (K * c_out) < 256
    fold_ds = has_downsample and fuse1
    sep_ds = has_downsample and not fold_ds
    rows1 = 2 * c_out if fold_ds else c_out

    # ---- generation query: VMEM capacity drives tile size / scoped limit ----
    try:
        vmem_phys = int(pltpu.get_tpu_info().vmem_capacity_bytes)
    except Exception:
        vmem_phys = 64 * 1024 * 1024       # conservative (v7x-like) fallback
    big_vmem = vmem_phys >= 100 * 1024 * 1024
    vmem_limit = (64 if big_vmem else 32) * 1024 * 1024

    # ---- pad L up to a lane multiple (causal conv: tail padding is harmless) ----
    L_pad = ((L + 127) // 128) * 128

    def tile_bytes(tl):
        lh = tl + pad
        by = 2 * c_in * tl * 2                               # x (double-buffered)
        if pad > 0:
            hw = 128 if 2 * pad <= 128 else tl
            by += 2 * c_in * hw * 2                          # halo stream
        by += rows1 * K * c_in * 2 + c_out * K * c_out * 2   # weights
        by += 2 * c_out * tl * out_dtype.itemsize            # output (double-buffered)
        if fuse1:
            by += K * c_in * lh * 2                          # stacked conv1 operand
        by += rows1 * lh * 4 + c_out * lh * 2                # h1r f32 + h1 bf16
        if fuse2:
            by += K * c_out * tl * 2                         # stacked conv2 operand
        by += 2 * c_out * tl * 4                             # h2 + res f32
        return by

    budget = int(0.6 * vmem_limit)
    cands = (2048, 1024, 512, 256, 128) if big_vmem else (512, 256, 128)

    if tile_l is not None:
        TL = tile_l
    else:
        TL = None
        for cand in cands:
            if cand > L_pad or L_pad % cand != 0:
                continue
            if L_pad // cand > 1 and 2 * pad > cand:
                continue                     # halo must fit in one previous tile
            if tile_bytes(cand) > budget:
                continue
            TL = cand
            break
        if TL is None:
            TL = 128 if (L_pad > 128 and 2 * pad <= 128) else L_pad
        # Keep both TensorCores busy on dual-TC parts for B == 1 inference.
        if B == 1 and TL == L_pad and L_pad % 256 == 0 and 2 * pad <= L_pad // 2:
            TL = L_pad // 2

    assert L_pad % TL == 0
    NT = L_pad // TL
    if NT > 1:
        assert TL % 128 == 0 and TL >= 2 * pad, "need lane-aligned tiles >= halo"

    has_prev = (NT > 1) and pad > 0
    halo_w = 0 if not has_prev else (128 if 2 * pad <= 128 else TL)

    # ---- glue: bf16 matmul operands, taps folded into the contraction axis ----
    x_in = x if L_pad == L else jnp.pad(x, ((0, 0), (0, 0), (0, L_pad - L)))
    x_bf = x_in.astype(jnp.bfloat16)

    w1_flat = jnp.transpose(w1, (0, 2, 1)).reshape(c_out, K * c_in)
    if fold_ds:
        wd_emb = jnp.concatenate(
            [jnp.zeros((c_out, (K - 1) * c_in), w1_flat.dtype), wd], axis=1)
        w1_flat = jnp.concatenate([w1_flat, wd_emb], axis=0)   # (2*C_out, K*C_in)
        b1_full = jnp.concatenate([b1, bd])
    else:
        b1_full = b1
    w1_f = w1_flat.astype(jnp.bfloat16)
    w2_f = jnp.transpose(w2, (0, 2, 1)).reshape(c_out, K * c_out).astype(jnp.bfloat16)
    b1_c = b1_full.reshape(rows1, 1).astype(jnp.float32)
    b2_c = b2.reshape(c_out, 1).astype(jnp.float32)

    def const(shape):
        return pl.BlockSpec(shape, lambda b, t: (0,) * len(shape))

    inputs = [x_bf]
    in_specs = [pl.BlockSpec((1, c_in, TL), lambda b, t: (b, 0, t))]
    if halo_w:
        # Same array, shifted left: supplies the causal halo (narrow when possible).
        inputs.append(x_bf)
        if halo_w == 128:
            cpt = TL // 128
            in_specs.append(pl.BlockSpec(
                (1, c_in, 128),
                lambda b, t: (b, 0, jnp.maximum(t * cpt - 1, 0))))
        else:
            in_specs.append(pl.BlockSpec(
                (1, c_in, TL), lambda b, t: (b, 0, jnp.maximum(t - 1, 0))))
    inputs += [w1_f, b1_c, w2_f, b2_c]
    in_specs += [const((rows1, K * c_in)), const((rows1, 1)),
                 const((c_out, K * c_out)), const((c_out, 1))]
    if sep_ds:
        inputs += [wd.astype(jnp.bfloat16), bd.reshape(c_out, 1).astype(jnp.float32)]
        in_specs += [const((c_out, c_in)), const((c_out, 1))]

    kernel = functools.partial(
        _temporal_block_kernel, K=K, dilation=dilation, pad=pad, TL=TL,
        c_out=c_out, halo_w=halo_w, fold_ds=fold_ds, sep_ds=sep_ds,
        fuse1=fuse1, fuse2=fuse2)

    out = pl.pallas_call(
        kernel,
        out_shape=jax.ShapeDtypeStruct((B, c_out, L_pad), out_dtype),
        grid=(B, NT),
        in_specs=in_specs,
        out_specs=pl.BlockSpec((1, c_out, TL), lambda b, t: (b, 0, t)),
        compiler_params=pltpu.CompilerParams(
            dimension_semantics=("parallel", "parallel"),
            vmem_limit_bytes=vmem_limit),
    )(*inputs)

    if L_pad != L:
        out = out[:, :, :L]
    return out


# ---------------- pure-JAX reference (for correctness check) ----------------
def _ref_temporal_block(x, w1, b1, w2, b2, wd, bd, *, dilation, padding):
    def causal_conv(inp, w, b):
        L = inp.shape[2]
        K = w.shape[2]
        xp = jnp.pad(inp, ((0, 0), (0, 0), (padding, 0)))
        out = jnp.zeros((inp.shape[0], w.shape[0], L), jnp.float32)
        for k in range(K):
            out = out + jnp.einsum('oc,bcl->bol', w[:, :, k],
                                   xp[:, :, k * dilation: k * dilation + L])
        return out + b[None, :, None]

    h1 = jax.nn.relu(causal_conv(x, w1, b1))
    h2 = jax.nn.relu(causal_conv(h1, w2, b2))
    if wd is None:
        res = x
    else:
        res = jnp.einsum('oc,bcl->bol', wd, x) + bd[None, :, None]
    return jax.nn.relu(h2 + res)


def _weight_norm_effective(v, g):
    # PyTorch weight_norm(dim=0): w = g * v / ||v||, norm over all dims but 0.
    norm = jnp.sqrt(jnp.sum(v * v, axis=(1, 2), keepdims=True))
    return g * v / norm


if __name__ == "__main__":
    # ---- test 1: TemporalBlock(4 -> 8, k=3, dilation=2), folded downsample ----
    B, n_in, n_out, L = 2, 4, 8, 16
    K, dilation = 3, 2
    padding = (K - 1) * dilation

    key = jax.random.PRNGKey(0)
    ks = jax.random.split(key, 8)

    v1 = 0.01 * jax.random.normal(ks[0], (n_out, n_in, K), jnp.float32)
    g1 = jnp.sqrt(jnp.sum(v1 * v1, axis=(1, 2), keepdims=True))
    w1 = _weight_norm_effective(v1, g1)
    b1 = 0.05 * jax.random.normal(ks[1], (n_out,), jnp.float32)

    v2 = 0.01 * jax.random.normal(ks[2], (n_out, n_out, K), jnp.float32)
    g2 = jnp.sqrt(jnp.sum(v2 * v2, axis=(1, 2), keepdims=True))
    w2 = _weight_norm_effective(v2, g2)
    b2 = 0.05 * jax.random.normal(ks[3], (n_out,), jnp.float32)

    wd = 0.01 * jax.random.normal(ks[4], (n_out, n_in), jnp.float32)
    bd = 0.05 * jax.random.normal(ks[5], (n_out,), jnp.float32)

    x = jax.random.normal(ks[6], (B, n_in, L), jnp.float32)

    out = temporal_block(x, w1, b1, w2, b2, wd, bd,
                         kernel_size=K, dilation=dilation, padding=padding)
    out = jax.block_until_ready(out)
    ref = _ref_temporal_block(x, w1, b1, w2, b2, wd, bd,
                              dilation=dilation, padding=padding)
    assert out.shape == (B, n_out, L)
    assert jnp.allclose(out, ref, atol=2e-2, rtol=2e-2), "test1 mismatch"

    # ---- test 2: 8 -> 8 identity residual, multi L-tile + narrow halo, bf16 out ----
    B2, C2, L2 = 2, 8, 512
    K2, d2 = 3, 4
    pad2 = (K2 - 1) * d2

    ks2 = jax.random.split(jax.random.PRNGKey(1), 6)
    v1b = 0.01 * jax.random.normal(ks2[0], (C2, C2, K2), jnp.float32)
    g1b = jnp.sqrt(jnp.sum(v1b * v1b, axis=(1, 2), keepdims=True))
    w1b = _weight_norm_effective(v1b, g1b)
    b1b = 0.05 * jax.random.normal(ks2[1], (C2,), jnp.float32)

    v2b = 0.01 * jax.random.normal(ks2[2], (C2, C2, K2), jnp.float32)
    g2b = jnp.sqrt(jnp.sum(v2b * v2b, axis=(1, 2), keepdims=True))
    w2b = _weight_norm_effective(v2b, g2b)
    b2b = 0.05 * jax.random.normal(ks2[3], (C2,), jnp.float32)

    x2 = jax.random.normal(ks2[4], (B2, C2, L2), jnp.float32)

    out2 = temporal_block(x2, w1b, b1b, w2b, b2b, None, None,
                          kernel_size=K2, dilation=d2, padding=pad2,
                          tile_l=128, out_dtype=jnp.bfloat16)
    out2 = jax.block_until_ready(out2)
    ref2 = _ref_temporal_block(x2, w1b, b1b, w2b, b2b, None, None,
                               dilation=d2, padding=pad2)
    assert out2.shape == (B2, C2, L2)
    assert out2.dtype == jnp.bfloat16
    assert jnp.allclose(out2.astype(jnp.float32), ref2,
                        atol=2e-2, rtol=2e-2), "test2 mismatch"

    # ---- test 3: 128 -> 128 (K*C >= 256 -> unfused taps), B=1 forced NT>=2 ----
    B3, C3, L3 = 1, 128, 256
    K3, d3 = 3, 1
    pad3 = (K3 - 1) * d3

    ks3 = jax.random.split(jax.random.PRNGKey(2), 5)
    v1c = 0.01 * jax.random.normal(ks3[0], (C3, C3, K3), jnp.float32)
    g1c = jnp.sqrt(jnp.sum(v1c * v1c, axis=(1, 2), keepdims=True))
    w1c = _weight_norm_effective(v1c, g1c)
    b1c = 0.05 * jax.random.normal(ks3[1], (C3,), jnp.float32)

    v2c = 0.01 * jax.random.normal(ks3[2], (C3, C3, K3), jnp.float32)
    g2c = jnp.sqrt(jnp.sum(v2c * v2c, axis=(1, 2), keepdims=True))
    w2c = _weight_norm_effective(v2c, g2c)
    b2c = 0.05 * jax.random.normal(ks3[3], (C3,), jnp.float32)

    x3 = jax.random.normal(ks3[4], (B3, C3, L3), jnp.float32)

    out3 = temporal_block(x3, w1c, b1c, w2c, b2c, None, None,
                          kernel_size=K3, dilation=d3, padding=pad3)
    out3 = jax.block_until_ready(out3)
    ref3 = _ref_temporal_block(x3, w1c, b1c, w2c, b2c, None, None,
                               dilation=d3, padding=pad3)
    assert out3.shape == (B3, C3, L3)
    assert jnp.allclose(out3, ref3, atol=2e-2, rtol=2e-2), "test3 mismatch"

    print("KERNEL_OK")
</pallas_src>

<mosaic_0001>
module attributes {stable_mosaic.version = 11 : i64} {
  func.func @_temporal_block_kernel(%arg0: i32, %arg1: i32, %arg2: memref<1x4x128xbf16, #tpu.memory_space<vmem>>, %arg3: memref<16x12xbf16, #tpu.memory_space<vmem>>, %arg4: memref<16x1xf32, #tpu.memory_space<vmem>>, %arg5: memref<8x24xbf16, #tpu.memory_space<vmem>>, %arg6: memref<8x1xf32, #tpu.memory_space<vmem>>, %arg7: memref<1x8x128xf32, #tpu.memory_space<vmem>>) attributes {dimension_semantics = [#tpu.dimension_semantics<parallel>, #tpu.dimension_semantics<parallel>], iteration_bounds = array<i64: 2, 1>, scalar_prefetch = 0 : i64, scratch_operands = 0 : i64, tpu.core_type = #tpu.core_type<tc>, window_params = [{transform_indices = @transform_0, window_bounds = array<i64: 1, 4, 128>}, {pipeline_mode = #tpu.pipeline_mode<synchronous>, transform_indices = @transform_1, window_bounds = array<i64: 16, 12>}, {pipeline_mode = #tpu.pipeline_mode<synchronous>, transform_indices = @transform_2, window_bounds = array<i64: 16, 1>}, {pipeline_mode = #tpu.pipeline_mode<synchronous>, transform_indices = @transform_3, window_bounds = array<i64: 8, 24>}, {pipeline_mode = #tpu.pipeline_mode<synchronous>, transform_indices = @transform_4, window_bounds = array<i64: 8, 1>}, {transform_indices = @transform_5, window_bounds = array<i64: 1, 8, 128>}]} {
    %c128_i32 = arith.constant 128 : i32
    %0 = arith.muli %arg1, %c128_i32 : i32
    %c0 = arith.constant 0 : index
    %c0_0 = arith.constant 0 : index
    %c0_1 = arith.constant 0 : index
    %1 = vector.load %arg2[%c0, %c0_0, %c0_1] : memref<1x4x128xbf16, #tpu.memory_space<vmem>>, vector<1x4x128xbf16>
    %2 = vector.shape_cast %1 : vector<1x4x128xbf16> to vector<4x128xbf16>
    %cst = arith.constant 0.000000e+00 : bf16
    %3 = vector.broadcast %cst : bf16 to vector<4x8xbf16>
    %4 = tpu.concatenate %3, %2 in 1 : vector<4x8xbf16>, vector<4x128xbf16> -> vector<4x136xbf16>
    %5 = vector.extract_strided_slice %4 {offsets = [0, 0], sizes = [4, 132], strides = [1, 1]} : vector<4x136xbf16> to vector<4x132xbf16>
    %6 = vector.extract_strided_slice %4 {offsets = [0, 2], sizes = [4, 132], strides = [1, 1]} : vector<4x136xbf16> to vector<4x132xbf16>
    %7 = vector.extract_strided_slice %4 {offsets = [0, 4], sizes = [4, 132], strides = [1, 1]} : vector<4x136xbf16> to vector<4x132xbf16>
    %8 = tpu.concatenate %5, %6, %7 in 0 : vector<4x132xbf16>, vector<4x132xbf16>, vector<4x132xbf16> -> vector<12x132xbf16>
    %c0_2 = arith.constant 0 : index
    %c0_3 = arith.constant 0 : index
    %9 = vector.load %arg3[%c0_2, %c0_3] : memref<16x12xbf16, #tpu.memory_space<vmem>>, vector<16x12xbf16>
    %cst_4 = arith.constant dense<0.000000e+00> : vector<16x132xf32>
    %10 = tpu.matmul %9, %8, %cst_4 {dimension_numbers = #tpu.dot_dimension_numbers<[1], [0], [0], [1], [0, 0, 1, 1], [], []>} : vector<16x12xbf16>, vector<12x132xbf16>, vector<16x132xf32> -> vector<16x132xf32>
    %c0_5 = arith.constant 0 : index
    %c0_6 = arith.constant 0 : index
    %11 = vector.load %arg4[%c0_5, %c0_6] : memref<16x1xf32, #tpu.memory_space<vmem>>, vector<16x1xf32>
    %12 = vector.broadcast %11 : vector<16x1xf32> to vector<16x132xf32>
    %13 = arith.addf %10, %12 : vector<16x132xf32>
    %14 = vector.extract_strided_slice %13 {offsets = [0, 0], sizes = [8, 132], strides = [1, 1]} : vector<16x132xf32> to vector<8x132xf32>
    %cst_7 = arith.constant 0.000000e+00 : f32
    %15 = vector.broadcast %cst_7 : f32 to vector<8x132xf32>
    %16 = arith.maximumf %14, %15 : vector<8x132xf32>
    %17 = tpu.iota {dimensions = array<i32: 1>} : vector<1x132xi32>
    %c4_i32 = arith.constant 4 : i32
    %18 = arith.subi %c4_i32, %0 : i32
    %19 = vector.broadcast %18 : i32 to vector<1x132xi32>
    %20 = arith.cmpi slt, %17, %19 : vector<1x132xi32>
    %cst_8 = arith.constant 0.000000e+00 : f32
    %21 = vector.shape_cast %20 : vector<1x132xi1> to vector<1x132xi1>
    %22 = vector.broadcast %21 : vector<1x132xi1> to vector<8x132xi1>
    %23 = vector.broadcast %cst_8 : f32 to vector<8x132xf32>
    %24 = arith.select %22, %23, %16 : vector<8x132xi1>, vector<8x132xf32>
    %25 = arith.truncf %24 : vector<8x132xf32> to vector<8x132xbf16>
    %26 = vector.extract_strided_slice %25 {offsets = [0, 0], sizes = [8, 128], strides = [1, 1]} : vector<8x132xbf16> to vector<8x128xbf16>
    %27 = vector.extract_strided_slice %25 {offsets = [0, 2], sizes = [8, 128], strides = [1, 1]} : vector<8x132xbf16> to vector<8x128xbf16>
    %28 = vector.extract_strided_slice %25 {offsets = [0, 4], sizes = [8, 128], strides = [1, 1]} : vector<8x132xbf16> to vector<8x128xbf16>
    %29 = tpu.concatenate %26, %27, %28 in 0 : vector<8x128xbf16>, vector<8x128xbf16>, vector<8x128xbf16> -> vector<24x128xbf16>
    %c0_9 = arith.constant 0 : index
    %c0_10 = arith.constant 0 : index
    %30 = vector.load %arg5[%c0_9, %c0_10] : memref<8x24xbf16, #tpu.memory_space<vmem>>, vector<8x24xbf16>
    %cst_11 = arith.constant dense<0.000000e+00> : vector<8x128xf32>
    %31 = tpu.matmul %30, %29, %cst_11 {dimension_numbers = #tpu.dot_dimension_numbers<[1], [0], [0], [1], [0, 0, 1, 1], [], []>} : vector<8x24xbf16>, vector<24x128xbf16>, vector<8x128xf32> -> vector<8x128xf32>
    %c0_12 = arith.constant 0 : index
    %c0_13 = arith.constant 0 : index
    %32 = vector.load %arg6[%c0_12, %c0_13] : memref<8x1xf32, #tpu.memory_space<vmem>>, vector<8x1xf32>
    %33 = vector.broadcast %32 : vector<8x1xf32> to vector<8x128xf32>
    %34 = arith.addf %31, %33 : vector<8x128xf32>
    %cst_14 = arith.constant 0.000000e+00 : f32
    %35 = vector.broadcast %cst_14 : f32 to vector<8x128xf32>
    %36 = arith.maximumf %34, %35 : vector<8x128xf32>
    %37 = vector.extract_strided_slice %13 {offsets = [8, 4], sizes = [8, 128], strides = [1, 1]} : vector<16x132xf32> to vector<8x128xf32>
    %38 = arith.addf %36, %37 : vector<8x128xf32>
    %cst_15 = arith.constant 0.000000e+00 : f32
    %39 = vector.broadcast %cst_15 : f32 to vector<8x128xf32>
    %40 = arith.maximumf %38, %39 : vector<8x128xf32>
    %c0_16 = arith.constant 0 : index
    %c0_17 = arith.constant 0 : index
    %c0_18 = arith.constant 0 : index
    %41 = vector.load %arg7[%c0_16, %c0_17, %c0_18] : memref<1x8x128xf32, #tpu.memory_space<vmem>>, vector<1x8x128xf32>
    %42 = vector.shape_cast %41 : vector<1x8x128xf32> to vector<8x128xf32>
    %43 = vector.shape_cast %40 : vector<8x128xf32> to vector<1x8x128xf32>
    tpu.vector_store %arg7[%c0_16, %c0_17, %c0_18], %43 {strides = array<i32>} : memref<1x8x128xf32, #tpu.memory_space<vmem>>, vector<1x8x128xf32>,
    return
  }
  func.func @transform_0(%arg0: i32, %arg1: i32) -> (i32, i32, i32) {
    %c0_i32 = arith.constant 0 : i32
    %c0_i32_0 = arith.constant 0 : i32
    return %arg0, %c0_i32, %arg1 : i32, i32, i32
  }
  func.func @transform_1(%arg0: i32, %arg1: i32) -> (i32, i32) {
    %c0_i32 = arith.constant 0 : i32
    %c0_i32_0 = arith.constant 0 : i32
    %c0_i32_1 = arith.constant 0 : i32
    return %c0_i32, %c0_i32_0 : i32, i32
  }
  func.func @transform_2(%arg0: i32, %arg1: i32) -> (i32, i32) {
    %c0_i32 = arith.constant 0 : i32
    %c0_i32_0 = arith.constant 0 : i32
    %c0_i32_1 = arith.constant 0 : i32
    return %c0_i32, %c0_i32_0 : i32, i32
  }
  func.func @transform_3(%arg0: i32, %arg1: i32) -> (i32, i32) {
    %c0_i32 = arith.constant 0 : i32
    %c0_i32_0 = arith.constant 0 : i32
    %c0_i32_1 = arith.constant 0 : i32
    return %c0_i32, %c0_i32_0 : i32, i32
  }
  func.func @transform_4(%arg0: i32, %arg1: i32) -> (i32, i32) {
    %c0_i32 = arith.constant 0 : i32
    %c0_i32_0 = arith.constant 0 : i32
    %c0_i32_1 = arith.constant 0 : i32
    return %c0_i32, %c0_i32_0 : i32, i32
  }
  func.func @transform_5(%arg0: i32, %arg1: i32) -> (i32, i32, i32) {
    %c0_i32 = arith.constant 0 : i32
    %c0_i32_0 = arith.constant 0 : i32
    return %arg0, %c0_i32, %arg1 : i32, i32, i32
  }
}

</mosaic_0001>

<bundles_post_ra>
// kernel: tpu_custom_call.1
= control target key start
LH: loop header
LB: loop body
LE: loop exit
PB: predicated region body
PF: predicated region fallthrough
CT: control target
= control target key end

     0   :  { %10 = vsyncpa [#allocation3], 0  ;;  %s902_s0 = inlined_call_operand.vmem [shape: bf16[2,4,128], index: 0, kind: input, shape index: {}]   ;;  %s903_s1 = inlined_call_operand.vmem [shape: bf16[16,12], index: 1, kind: input, shape index: {}]   ;;  %s904_s2 = inlined_call_operand.vmem [shape: f32[16,1], index: 2, kind: input, shape index: {}]   ;;  %s905_s3 = inlined_call_operand.vmem [shape: bf16[8,24], index: 3, kind: input, shape index: {}]   ;;  %s906_s4 = inlined_call_operand.vmem [shape: f32[8,1], index: 4, kind: input, shape index: {}]   ;;  %s907_s5 = inlined_call_operand.hbm [shape: f32[2,8,128], index: 5, kind: output, shape index: {}]  }
   0x1   :  { %12 = vsyncpa [#allocation3 + $0x1], 0  ;;  %s756_s18 = smov 0   ;;  %s758_s19 = smov 0  }
   0x2   :  { %s760_s20 = smov 0   ;;  %s762_s21 = smov 0  }
   0x3   :  { %s764_s22 = smov 0   ;;  %s766_s23 = smov 0  }
   0x4 LB: > { %s548_s24 = sadd.s32 4294967295, %s717_s23   ;;  %s549_s25 = sadd.s32 4294967294, %s717_s23   ;;  %s717_s23 = sphi %s766_s23, %s18_s23   ;;  %s713_s22 = sphi %s764_s22, %s914_s22   ;;  %s709_s21 = sphi %s762_s21, %s913_s21   ;;  %s705_s20 = sphi %s760_s20, %s912_s20   ;;  %s701_s19 = sphi %s758_s19, %s911_s19   ;;  %s697_s18 = sphi %s756_s18, %s910_s18  }
   0x5   : > { %s30_s26 = sadd.s32 1, %s713_s22  ;;  %s151_s27 = sadd.s32 1, %s705_s20 }
   0x6   : > { %p32_p0 = scmp.ge.s32.totalorder %s30_s26, 2  ;;  %p161_p1 = scmp.ne.s32.totalorder %s705_s20, %s701_s19 }
   0x7   : > { %p162_p2 = scmp.eq.s32.totalorder %s548_s24, 1  ;;  %p167_p3 = scmp.ne.s32.totalorder %s701_s19, %s697_s18 }
   0x8   : > { %s916_s26 = smov (%p32_p0, %s30_s26), 0  ;;  %p168_p5 = scmp.eq.s32.totalorder %s549_s25, 1 }
   0x9   : > { %p796_p4 = por %p162_p2, %p161_p1  ;;  %s146_s29 = ssub.s32 %s713_s22, %s916_s26 }
   0xa   : > { %p552_p6 = scmp.ge.s32.totalorder %s717_s23, 1  ;;  %p149_p7 = scmp.eq.s32.totalorder %s146_s29, 0 }
   0xb   : > { %p803_p8 = por %p168_p5, %p167_p3  ;;  %p208_p9 = scmp.lt.s32.totalorder %s717_s23, 3 }
   0xc   : > { %s809_s6 = scalar_select %p149_p7, %s705_s20, %s151_s27  }
   0xd   : > { %p209_p10 = pnand %p552_p6, %p208_p9 }
   0xe   : > { %p238_p11 = scmp.lt.s32.totalorder (!%p209_p10), %s709_s21, 1  ;;  %s719_s12 = smov (!%p209_p10), 8   ;;  %vm258_vm0 = vcmask (!%p209_p10), 64512   ;;  %v720_v1 = vmov (!%p209_p10), 0   ;;  %v291_v8 = vld [vmem:[%s904_s2] sm:$0xff] (!%p209_p10)  ;;  %vm269_vm1 = vcmask (!%p209_p10), 1031168   ;;  %v362_v21 = vlaneseq (!%p209_p10) }
   0xf   : > { %212 = sbr.rel (%p209_p10) target bundleno = 849 (0x351), region = 40  ;;  %349 = vmatprep.mubr.bf16.mxu0 (!%p209_p10), %v720_v1  ;;  %636 = vset.pattern.permute.xlu1 (!%p209_p10), %v720_v1  ;;  %s721_s13 = smov (!%p209_p10), 126   ;;  %vm279_vm2 = vcmask (!%p209_p10), 1041408   ;;  %vm277_vm3 = vcmask (!%p209_p10), 1014784   ;;  %vm284_vm4 = vcmask (!%p209_p10), 1043456   ;;  %vm312_vm5 = vcmask (!%p209_p10), 1045504  }
  0x10   : > { %637 = vset.pattern.permute.xlu0 (!%p209_p10), %v720_v1  ;;  %s722_s14 = smov (!%p209_p10), 124   ;;  %v638_v20 = vld [vmem:[%s903_s1] sm:$0xff] (!%p209_p10)   ;;  %vm308_vm6 = vcmask (!%p209_p10), 97280   ;;  %v363_v22 = vand.u32 (!%p209_p10), 127, %v362_v21  ;;  %v723_v24 = vmov (!%p209_p10), 0.0   ;;  %vm724_vm8 = vmmov (!%p209_p10), 0  }
  0x11   : > { %567 = vmatprep.subr.bf16.mxu1 (!%p209_p10), %v723_v24  ;;  %571 = vmatprep.mubr.msk.bf16.mxu1 (!%p209_p10), %vm724_vm8, %v723_v24  ;;  %v396_v38 = vld [vmem:[%s906_s4] sm:$0xff] (!%p209_p10)  ;;  %v292_v39 = vld [vmem:[%s904_s2 + $0x8] sm:$0xff] (!%p209_p10)  ;;  %vm402_vm9 = vcmask (!%p209_p10), 195584   ;;  %s235_s10 = sand.u32 (!%p209_p10), 1, %s701_s19  }
  0x12   : > { %vm367_vm7 = vcmp.lt.s32.totalorder (!%p209_p10), %v363_v22, 4  ;;  %v395_v48 = vld [vmem:[%s905_s3] sm:$0xf] (!%p209_p10)  ;;  %s463_s24 = scalar_lea.sflag (!%p209_p10), [#allocation3], %s235_s10 }
  0x16   : > { %s239_s7 = scalar_select %p238_p11, %s709_s21, 1 }
  0x18   : > { %s554_s8 = sshll.u32 %s239_s7, 1 }
  0x19   : > { %s244_s11 = scalar_lea.vmem %s902_s0, %s554_s8 }
  0x1a   : > { %v555_v0 = vld.sshfl [vmem:[%s244_s11] sm:$0x3 pattern:$0x76325410]  ;;  %s553_s11 = sshll.u32 %s235_s10, 3 }
  0x1b   : > { %256 = vrot.lane.b32.xlu0 %v555_v0, %s719_s12  ;;  %s561_s12 = sshll.u32 %s709_s21, 7  ;;  %s725_s21 = smov [#allocation2]  }
  0x1c   : > { %s855_s17 = scalar_lea.hbm %s907_s5, %s561_s12  ;;  %s643_s27 = sshll.u32 %s725_s21, 4  ;;  %s644_s27 = int_to_ptr.vmem [resolvable:$false] %s643_s27 }
  0x1d   : > { %s645_s29 = scalar_lea.vmem %s644_s27, 256 }
  0x8d   : > { %v257_v2 = vpop.permute.xlu0 %256 }
  0x8e   : > { %v261_v3 = vsel %vm258_vm0, 0, %v257_v2  ;;  %v264_v4 = vrot.slane %v257_v2, 6  ;;  %v272_v7 = vrot.slane %v257_v2, 4 }
  0x8f   : > { %v263_v5 = vrot.slane %v261_v3, 6  ;;  %v271_v6 = vrot.slane %v261_v3, 4 }
  0x90   : > { %267 = vrot.lane.b32.xlu1 %v264_v4, %s721_s13 }
  0x91   : > { %265 = vrot.lane.b32.xlu0 %v263_v5, %s721_s13 }
  0x94   : > { %273 = vrot.lane.b32.xlu1 %v271_v6, %s722_s14 }
  0x95   : > { %275 = vrot.lane.b32.xlu0 %v272_v7, %s722_s14 }
  0x98   : > { %295 = vperm.xlu1 %636, %v291_v8  }
 0x102   : > { %v268_v9 = vpop.permute.xlu1 %267 }
 0x103   : > { %v266_v10 = vpop.permute.xlu0 %265  ;;  %v283_v13 = vsel %vm279_vm2, %v257_v2, %v268_v9 }
 0x104   : > { %v270_v11 = vsel %vm269_vm1, %v266_v10, %v268_v9 }
 0x105   : > { %v281_v17 = vsel %vm279_vm2, %v261_v3, %v270_v11 }
 0x106   : > { %v274_v12 = vpop.permute.xlu1 %273 }
 0x107   : > { %v276_v14 = vpop.permute.xlu0 %275 }
 0x108   : > { %v278_v15 = vsel %vm277_vm3, %v274_v12, %v276_v14  ;;  %v288_v16 = vsel %vm284_vm4, %v283_v13, %v276_v14 }
 0x109   : > { %557 = vmatprep.subr.msk.bf16.mxu0 %vm312_vm5, %v288_v16  ;;  %v286_v18 = vsel %vm284_vm4, %v281_v17, %v278_v15 }
 0x10a   : > { %v313_v19 = vsel %vm312_vm5, %v286_v18, 0 }
 0x10b   : > { %318 = vmatpush1.bf16.msra.mxu0 %v313_v19 }
 0x10e   : > { %558 = vmatmul.mubr.msk.bf16.vlgmr.msra.gmra.mrb[0].mxu0 %vm308_vm6, %v638_v20 }
 0x117   : > { %v296_v23 = vpop.permute.xlu1 %295 }
 0x1e1   : > { %v351_v25 = vpop.f32.mrb[0].mxu0 }
 0x1e2   : > { %v352_v26 = vadd.f32 %v351_v25, %v296_v23  ;;  %v353_v27 = vpop.f32.mrb[1].mxu0 }
 0x1e3   : > { %v354_v28 = vadd.f32 %v353_v27, %v296_v23  ;;  %v355_v29 = vpop.f32.mrb[2].mxu0 }
 0x1e4   : > { %v360_v30 = vmax.f32 %v352_v26, 0.0  ;;  %v357_v31 = vpop.f32.mrb[3].mxu0 }
 0x1e5   : > { %v361_v32 = vmax.f32 %v354_v28, 0.0 }
 0x1e6   : > { %v373_v33 = vsel %vm367_vm7, 0.0, %v360_v30 }
 0x1e7   : > { %v375_v34 = vpack.c.bf16 %v373_v33, %v373_v33  ;;  %v376_v35 = vpack.c.bf16 %v361_v32, %v361_v32 }
 0x1e9   : > { %v380_v36 = vrot.slane %v376_v35, 4  ;;  %v379_v37 = vrot.slane %v375_v34, 4 }
 0x1eb   : > { %383 = vrot.lane.b32.xlu1 %v380_v36, %s721_s13  ;;  %381 = vrot.lane.b32.xlu0 %v379_v37, %s721_s13  ;;  %s237_s13 = scalar_lea.vmem [#allocation2], %s553_s11 }
 0x1ec   : > { %s477_s15 = sshll.u32 %s237_s13, 4  ;;  %s857_s15 = int_to_ptr.vmem [resolvable:$true] %s477_s15 }
 0x1ed   : > { %s639_s25 = scalar_lea.vmem %s857_s15, 128  ;;  %p646_p1 = scmp.lt.s32.totalorder %s857_s15, %s644_s27 }
 0x1ee   : > { %p640_p12 = scmp.ne.s32.totalorder %s857_s15, %s639_s25  ;;  %p647_p2 = scmp.lt.s32.totalorder %s645_s29, %s639_s25 }
 0x1ef   : > { %388 = vrot.lane.b32.xlu1 %v376_v35, %s722_s14  ;;  %386 = vrot.lane.b32.xlu0 %v375_v34, %s722_s14 }
 0x1f0   : > { %p641_p13 = pnand %p640_p12, %p796_p4  ;;  %p648_p3 = por %p647_p2, %p646_p1 }
 0x1f2   : > { %p642_p0 = pneg %p641_p13 }
 0x1f3   : > { %399 = vperm.xlu1 %636, %v396_v38   ;;  %300 = vperm.xlu0 %637, %v292_v39  }
 0x1f4   : > { %p649_p5 = pnand %p648_p3, %p642_p0 }
 0x25d   : > { %v384_v40 = vpop.permute.xlu1 %383  ;;  %v382_v41 = vpop.permute.xlu0 %381 }
 0x25e   : > { %v385_v42 = vsel %vm269_vm1, %v382_v41, %v384_v40 }
 0x25f   : > { %v393_v43 = vsel %vm284_vm4, %v375_v34, %v385_v42 }
 0x260   : > { %568 = vmatpush3.bf16.msra.mxu1 %v393_v43 }
 0x261   : > { %v389_v44 = vpop.permute.xlu1 %388  ;;  %v387_v45 = vpop.permute.xlu0 %386  ;;  %569 = vmatprep.subr.bf16.mxu1 %v723_v24 }
 0x262   : > { %v390_v46 = vsel %vm277_vm3, %v387_v45, %v389_v44 }
 0x263   : > { %v407_v47 = vsel %vm284_vm4, %v390_v46, 0 }
 0x264   : > { %570 = vmatpush3.bf16.msra.mxu1 %v407_v47 }
 0x267   : > { %572 = vmatmul.mubr.msk.bf16.vlgmr.msra.gmra.mrb[0].mxu1 %vm402_vm9, %v395_v48 }
 0x272   : > { %v301_v49 = vpop.permute.xlu0 %300  ;;  %v400_v52 = vpop.permute.xlu1 %399 }
 0x273   : > { %v356_v50 = vadd.f32 %v355_v29, %v301_v49  ;;  %v358_v51 = vadd.f32 %v357_v31, %v301_v49 }
 0x275   : > { %454 = vrot.lane.b32.xlu0 %v358_v51, %s722_s14  ;;  %452 = vrot.lane.b32.xlu1 %v356_v50, %s722_s14 }
 0x2e7   : > { %v455_v53 = vpop.permute.xlu0 %454  ;;  %v453_v55 = vpop.permute.xlu1 %452 }
 0x2e8   : > { %v457_v61 = vsel %vm277_vm3, %v453_v55, %v455_v53 }
 0x33a   : > { %v443_v54 = vpop.f32.mrb[0].mxu1 }
 0x33b   : > { %v444_v56 = vadd.f32 %v443_v54, %v400_v52  ;;  %v573_v57 = vpop.f32.mrb[1].mxu1 }
 0x33c   : > { %v446_v58 = vpop.f32.mrb[2].mxu1 }
 0x33d   : > { %v449_v59 = vmax.f32 %v444_v56, 0.0  ;;  %v574_v60 = vpop.f32.mrb[3].mxu1 }
 0x33f   : > { %v459_v62 = vadd.f32 %v457_v61, %v449_v59 }
 0x341   : > { %v460_v63 = vmax.f32 %v459_v62, 0.0 }
 0x343   : > { %461 = vst [vmem:[%s237_s13] sm:$0xff] %v460_v63 }
 0x344   : > { %652 = shalt.err (!%p649_p5)
}
 0x345   : > { %s653_s7 = scalar_lea.hbm %s855_s17, 128  ;;  %s657_s10 = scalar_lea.hbm %s907_s5, 256 }
 0x346   : > { %p654_p6 = scmp.ne.s32.totalorder %s855_s17, %s653_s7  ;;  %p658_p10 = scmp.lt.u32.totalorder %s855_s17, %s907_s5 }
 0x347   : > { %p659_p11 = scmp.lt.u32.totalorder %s657_s10, %s653_s7  ;;  %p661_p13 = scmp.lt.u32.totalorder %s653_s7, %s855_s17 }
 0x348   : > { %p655_p7 = pnand %p654_p6, %p796_p4 }
 0x349   : > { %p660_p12 = por %p659_p11, %p658_p10 }
 0x34a   : > { %p656_p9 = pneg %p655_p7 }
 0x34b   : > { %p662_p0 = por %p661_p13, %p660_p12 }
 0x34d   : > { %p663_p1 = pnand %p662_p0, %p656_p9 }
 0x34f   : > { %666 = shalt.err (!%p663_p1)
}
 0x350   : > { %575 = dma.vmem_to_hbm [thread:$0]  (%p796_p4), %s857_s15, 128, %s855_s17, %s463_s24  }
 0x351 PF: > { %p581_p2 = scmp.ge.s32.totalorder %s717_s23, 2  ;;  %s489_s13 = sand.u32 1, %s697_s18  }
 0x352   : > { %s490_s14 = scalar_lea.sflag [#allocation3], %s489_s13 }
 0x353   : > { %p578_p3 = pnand %p581_p2, %p803_p8 }
 0x355   : > { %692 = dma.done.wait (!%p578_p3), %s490_s14, 128  }
 0x356   : > { %694 = vsyncadd (!%p578_p3), %s490_s14, 4294967168  ;;  %s18_s23 = sadd.s32 1, %s717_s23   ;;  %s910_s18 = smov %s701_s19 }
 0x357   : > { %p15_p5 = scmp.ge.s32.totalorder %s18_s23, 4   ;;  %s911_s19 = smov %s705_s20 }
 0x358   : > { %s912_s20 = smov %s809_s6  ;;  %s913_s21 = smov %s713_s22 }
 0x359   : > { %s914_s22 = smov %s916_s26  ;;  %17 = sbr.rel (!%p15_p5) target bundleno = 4 (0x4), region = 75 }
 0x360   :  { %495 = vsyncpa [#allocation3], 1 }
 0x361   :  { %497 = vsyncpa [#allocation3 + $0x1], 1 }

</bundles_post_ra>
